<compile_context>
chip_gen: v7x
topology: tpu7x:2x2x1
jax: 0.10.0
libtpu: 0.0.40
codegen_flags: <defaults>
</compile_context>

<pallas_src>
import jax
import jax.numpy as jnp
from jax.experimental import pallas as pl
from jax.experimental.pallas import tpu as pltpu


def _affine_bias_kernel(x_ref, w_ref, b_ref, o_ref, acc_ref):
    """One (tm, tn) output tile; accumulates over the K grid axis."""
    @pl.when(pl.program_id(2) == 0)
    def _init():
        acc_ref[...] = jnp.zeros_like(acc_ref)

    acc_ref[...] += jnp.dot(
        x_ref[...], w_ref[...], preferred_element_type=jnp.float32
    )

    @pl.when(pl.program_id(2) == pl.num_programs(2) - 1)
    def _finalize():
        o_ref[...] = (
            acc_ref[...] + b_ref[...].astype(jnp.float32)
        ).astype(o_ref.dtype)


def _affine_nobias_kernel(x_ref, w_ref, o_ref, acc_ref):
    @pl.when(pl.program_id(2) == 0)
    def _init():
        acc_ref[...] = jnp.zeros_like(acc_ref)

    acc_ref[...] += jnp.dot(
        x_ref[...], w_ref[...], preferred_element_type=jnp.float32
    )

    @pl.when(pl.program_id(2) == pl.num_programs(2) - 1)
    def _finalize():
        o_ref[...] = acc_ref[...].astype(o_ref.dtype)


def _pick_k_tile(K, tk_max):
    """The contraction axis must be covered exactly by its tiles (masked
    padding on K would corrupt the accumulation), so pick a divisor of K."""
    if K <= tk_max:
        return K
    for cand in range(tk_max, 7, -1):
        if cand % 8 == 0 and K % cand == 0:
            return cand
    # No nicely aligned divisor: keep the full contraction resident.
    # TODO(synk): pad K in the wrapper for huge prime-ish in_features.
    return K


def affine_linear(x, weight, has_bias=True, *, tm=256, tn=256, tk=512,
                  vmem_limit_bytes=32 * 1024 * 1024):
    """Pallas equivalent of AffineLinear.forward.

    x      : (M, in_features)
    weight : (in_features + 1, out_features) if has_bias else
             (in_features,     out_features)    -- packed exactly like torch.
    """
    M, K = x.shape
    w_rows, N = weight.shape
    expected = K + 1 if has_bias else K
    if w_rows != expected:
        raise ValueError(f"weight has {w_rows} rows, expected {expected}")

    out_dtype = jnp.result_type(x.dtype, weight.dtype)

    # Clamp tiles to the problem; a tile equal to the full dim always
    # satisfies the (8, 128) layout rule, otherwise keep 8/128 multiples.
    tm_eff = M if M <= tm else tm
    tn_eff = N if N <= tn else tn
    tk_eff = _pick_k_tile(K, tk)

    m_tiles = pl.cdiv(M, tm_eff)
    n_tiles = pl.cdiv(N, tn_eff)
    k_tiles = K // tk_eff
    grid = (m_tiles, n_tiles, k_tiles)

    x_spec = pl.BlockSpec((tm_eff, tk_eff), lambda i, j, k: (i, k))
    # The packed parameter is indexed directly.  Blocks only ever cover rows
    # [0, K) because tk_eff divides K, so the bias row is never touched here
    # and no HBM copy of weight[:-1] is made.
    w_spec = pl.BlockSpec((tk_eff, tn_eff), lambda i, j, k: (k, j))
    out_spec = pl.BlockSpec((tm_eff, tn_eff), lambda i, j, k: (i, j))

    bytes_accessed = int(
        x.size * x.dtype.itemsize
        + weight.size * weight.dtype.itemsize
        + M * N * jnp.dtype(out_dtype).itemsize
    )
    cost = pl.CostEstimate(
        flops=2 * M * K * N,
        transcendentals=0,
        bytes_accessed=bytes_accessed,
    )

    compiler_params = pltpu.CompilerParams(
        dimension_semantics=("parallel", "parallel", "arbitrary"),
        vmem_limit_bytes=vmem_limit_bytes,
    )
    scratch = [pltpu.VMEM((tm_eff, tn_eff), jnp.float32)]

    if has_bias:
        bias = weight[K:K + 1, :]  # (1, N): N*itemsize bytes, negligible.
        b_spec = pl.BlockSpec((1, tn_eff), lambda i, j, k: (0, j))
        return pl.pallas_call(
            _affine_bias_kernel,
            out_shape=jax.ShapeDtypeStruct((M, N), out_dtype),
            grid_spec=pltpu.PrefetchScalarGridSpec(
                num_scalar_prefetch=0,
                grid=grid,
                in_specs=[x_spec, w_spec, b_spec],
                out_specs=out_spec,
                scratch_shapes=scratch,
            ),
            compiler_params=compiler_params,
            cost_estimate=cost,
        )(x, weight, bias)

    return pl.pallas_call(
        _affine_nobias_kernel,
        out_shape=jax.ShapeDtypeStruct((M, N), out_dtype),
        grid_spec=pltpu.PrefetchScalarGridSpec(
            num_scalar_prefetch=0,
            grid=grid,
            in_specs=[x_spec, w_spec],
            out_specs=out_spec,
            scratch_shapes=scratch,
        ),
        compiler_params=compiler_params,
        cost_estimate=cost,
    )(x, weight)


def affine_linear_ref(x, weight, has_bias=True):
    if has_bias:
        return x @ weight[:-1] + weight[-1]
    return x @ weight


if __name__ == "__main__":
    key = jax.random.PRNGKey(0)
    kx, kw, kx2, kw2 = jax.random.split(key, 4)

    # --- has_bias=True (parameter packed exactly like the torch module) ---
    batch, in_features, out_features = 8, 32, 128
    w = jax.random.normal(kw, (in_features, out_features), dtype=jnp.float32)
    w = w * (in_features ** -0.5)
    b = jnp.zeros((1, out_features), dtype=jnp.float32)
    weight = jnp.concatenate([w, b], axis=0)        # (in_features + 1, out)
    x = jax.random.normal(kx, (batch, in_features), dtype=jnp.float32)

    out = jax.block_until_ready(affine_linear(x, weight, has_bias=True))
    ref = affine_linear_ref(x, weight, has_bias=True)
    assert out.shape == (batch, out_features)
    assert jnp.allclose(out, ref, atol=1e-5, rtol=1e-5), "bias case mismatch"

    # --- has_bias=False (no dummy bias input is created or DMA'd) ---
    batch2, in2, out2 = 2, 32, 128
    w2 = jax.random.normal(kw2, (in2, out2), dtype=jnp.float32) * (in2 ** -0.5)
    x2 = jax.random.normal(kx2, (batch2, in2), dtype=jnp.float32)

    out_nb = jax.block_until_ready(affine_linear(x2, w2, has_bias=False))
    ref_nb = affine_linear_ref(x2, w2, has_bias=False)
    assert out_nb.shape == (batch2, out2)
    assert jnp.allclose(out_nb, ref_nb, atol=1e-5, rtol=1e-5), "no-bias mismatch"

    print("KERNEL_OK")
</pallas_src>

<mosaic_0001>
module attributes {stable_mosaic.version = 11 : i64} {
  func.func @_affine_bias_kernel(%arg0: i32, %arg1: i32, %arg2: i32, %arg3: memref<8x32xf32, #tpu.memory_space<vmem>>, %arg4: memref<32x128xf32, #tpu.memory_space<vmem>>, %arg5: memref<1x128xf32, #tpu.memory_space<vmem>>, %arg6: memref<8x128xf32, #tpu.memory_space<vmem>>, %arg7: memref<8x128xf32, #tpu.memory_space<vmem>>) attributes {dimension_semantics = [#tpu.dimension_semantics<parallel>, #tpu.dimension_semantics<parallel>, #tpu.dimension_semantics<arbitrary>], iteration_bounds = array<i64: 1, 1, 1>, scalar_prefetch = 0 : i64, scratch_operands = 1 : i64, tpu.core_type = #tpu.core_type<tc>, window_params = [{transform_indices = @transform_0, window_bounds = array<i64: 8, 32>}, {transform_indices = @transform_1, window_bounds = array<i64: 32, 128>}, {transform_indices = @transform_2, window_bounds = array<i64: 1, 128>}, {transform_indices = @transform_3, window_bounds = array<i64: 8, 128>}]} {
    %c0_i32 = arith.constant 0 : i32
    %0 = arith.cmpi eq, %arg2, %c0_i32 : i32
    %1 = arith.extui %0 : i1 to i32
    %c0_i32_0 = arith.constant 0 : i32
    %2 = arith.cmpi ne, %1, %c0_i32_0 : i32
    scf.if %2 {
      %cst_10 = arith.constant 0.000000e+00 : f32
      %12 = vector.broadcast %cst_10 : f32 to vector<8x128xf32>
      %c0_11 = arith.constant 0 : index
      %c0_12 = arith.constant 0 : index
      %13 = vector.load %arg7[%c0_11, %c0_12] : memref<8x128xf32, #tpu.memory_space<vmem>>, vector<8x128xf32>
      tpu.vector_store %arg7[%c0_11, %c0_12], %12 {strides = array<i32>} : memref<8x128xf32, #tpu.memory_space<vmem>>, vector<8x128xf32>,
    } else {
    }
    %c0 = arith.constant 0 : index
    %c0_1 = arith.constant 0 : index
    %3 = vector.load %arg7[%c0, %c0_1] : memref<8x128xf32, #tpu.memory_space<vmem>>, vector<8x128xf32>
    %c0_2 = arith.constant 0 : index
    %c0_3 = arith.constant 0 : index
    %4 = vector.load %arg3[%c0_2, %c0_3] : memref<8x32xf32, #tpu.memory_space<vmem>>, vector<8x32xf32>
    %c0_4 = arith.constant 0 : index
    %c0_5 = arith.constant 0 : index
    %5 = vector.load %arg4[%c0_4, %c0_5] : memref<32x128xf32, #tpu.memory_space<vmem>>, vector<32x128xf32>
    %cst = arith.constant dense<0.000000e+00> : vector<8x128xf32>
    %6 = tpu.matmul %4, %5, %cst {dimension_numbers = #tpu.dot_dimension_numbers<[1], [0], [0], [1], [0, 0, 1, 1], [], []>} : vector<8x32xf32>, vector<32x128xf32>, vector<8x128xf32> -> vector<8x128xf32>
    %7 = arith.addf %3, %6 : vector<8x128xf32>
    %c0_6 = arith.constant 0 : index
    %c0_7 = arith.constant 0 : index
    %8 = vector.load %arg7[%c0_6, %c0_7] : memref<8x128xf32, #tpu.memory_space<vmem>>, vector<8x128xf32>
    tpu.vector_store %arg7[%c0_6, %c0_7], %7 {strides = array<i32>} : memref<8x128xf32, #tpu.memory_space<vmem>>, vector<8x128xf32>,
    %c0_i32_8 = arith.constant 0 : i32
    %9 = arith.cmpi eq, %arg2, %c0_i32_8 : i32
    %10 = arith.extui %9 : i1 to i32
    %c0_i32_9 = arith.constant 0 : i32
    %11 = arith.cmpi ne, %10, %c0_i32_9 : i32
    scf.if %11 {
      %c0_10 = arith.constant 0 : index
      %c0_11 = arith.constant 0 : index
      %12 = vector.load %arg7[%c0_10, %c0_11] : memref<8x128xf32, #tpu.memory_space<vmem>>, vector<8x128xf32>
      %c0_12 = arith.constant 0 : index
      %c0_13 = arith.constant 0 : index
      %13 = vector.load %arg5[%c0_12, %c0_13] : memref<1x128xf32, #tpu.memory_space<vmem>>, vector<1x128xf32>
      %14 = vector.broadcast %13 : vector<1x128xf32> to vector<8x128xf32>
      %15 = arith.addf %12, %14 : vector<8x128xf32>
      %c0_14 = arith.constant 0 : index
      %c0_15 = arith.constant 0 : index
      %16 = vector.load %arg6[%c0_14, %c0_15] : memref<8x128xf32, #tpu.memory_space<vmem>>, vector<8x128xf32>
      tpu.vector_store %arg6[%c0_14, %c0_15], %15 {strides = array<i32>} : memref<8x128xf32, #tpu.memory_space<vmem>>, vector<8x128xf32>,
    } else {
    }
    return
  }
  func.func @transform_0(%arg0: i32, %arg1: i32, %arg2: i32) -> (i32, i32) {
    %c0_i32 = arith.constant 0 : i32
    return %arg0, %arg2 : i32, i32
  }
  func.func @transform_1(%arg0: i32, %arg1: i32, %arg2: i32) -> (i32, i32) {
    %c0_i32 = arith.constant 0 : i32
    return %arg2, %arg1 : i32, i32
  }
  func.func @transform_2(%arg0: i32, %arg1: i32, %arg2: i32) -> (i32, i32) {
    %c0_i32 = arith.constant 0 : i32
    %c0_i32_0 = arith.constant 0 : i32
    return %c0_i32, %arg1 : i32, i32
  }
  func.func @transform_3(%arg0: i32, %arg1: i32, %arg2: i32) -> (i32, i32) {
    %c0_i32 = arith.constant 0 : i32
    return %arg0, %arg1 : i32, i32
  }
}

</mosaic_0001>

<bundles_post_ra>
// kernel: tpu_custom_call.1
= control target key start
LH: loop header
LB: loop body
LE: loop exit
PB: predicated region body
PF: predicated region fallthrough
CT: control target
= control target key end

     0   :  { %8 = vsyncpa [#allocation4], 0  ;;  %s338_s0 = inlined_call_operand.hbm [shape: f32[8,32], index: 0, kind: input, shape index: {}]   ;;  %s339_s1 = inlined_call_operand.hbm [shape: f32[33,128], index: 1, kind: input, shape index: {}]   ;;  %s340_s2 = inlined_call_operand.vmem [shape: f32[1,128], index: 2, kind: input, shape index: {}]   ;;  %s341_s3 = inlined_call_operand.hbm [shape: f32[8,128], index: 3, kind: output, shape index: {}]  }
   0x1   :  { %9 = vsyncpa [#allocation7], 0 }
   0x2   :  { %10 = vsyncpa [#allocation5], 0  ;;  %s261_s12 = smov [#allocation3]   ;;  %s262_s14 = smov [#allocation6]  }
   0x3   :  { %s17_s13 = sshll.u32 %s261_s12, 4  ;;  %s26_s15 = sshll.u32 %s262_s14, 4  ;;  %s18_s13 = int_to_ptr.vmem [resolvable:$true] %s17_s13  ;;  %s289_s15 = int_to_ptr.vmem [resolvable:$true] %s26_s15 }
   0x4   :  { %s189_s18 = scalar_lea.hbm %s338_s0, 128 }
   0x5   :  { %p190_p0 = scmp.ne.s32.totalorder %s338_s0, %s189_s18  ;;  %p193_p1 = scmp.lt.u32.totalorder %s189_s18, %s338_s0 }
   0x7   :  { %p195_p2 = pnand %p193_p1, %p190_p0 }
   0x9   :  { %198 = shalt.err (!%p195_p2)
}
   0xa   :  { %s199_s23 = scalar_lea.vmem %s18_s13, 128  ;;  %p204_p4 = scmp.lt.s32.totalorder %s18_s13, %s18_s13 }
   0xb   :  { %p200_p3 = scmp.ne.s32.totalorder %s18_s13, %s199_s23  ;;  %p205_p5 = scmp.lt.s32.totalorder %s199_s23, %s199_s23 }
   0xd   :  { %p206_p6 = por %p205_p5, %p204_p4 }
   0xf   :  { %p207_p7 = pnand %p206_p6, %p200_p3 }
  0x11   :  { %210 = shalt.err (!%p207_p7)
}
  0x12   :  { %20 = dma.hbm_to_vmem [thread:$0]  %s338_s0, 128, %s18_s13, [#allocation4]  }
  0x13   :  { %s211_s28 = scalar_lea.hbm %s339_s1, 512  ;;  %s213_s6 = scalar_lea.hbm %s339_s1, 640 }
  0x14   :  { %p212_p8 = scmp.ne.s32.totalorder %s339_s1, %s211_s28  ;;  %p214_p9 = scmp.lt.u32.totalorder %s213_s6, %s211_s28 }
  0x15   :  { %p215_p10 = scmp.lt.u32.totalorder %s211_s28, %s339_s1 }
  0x17   :  { %p216_p11 = por %p215_p10, %p214_p9 }
  0x19   :  { %p217_p12 = pnand %p216_p11, %p212_p8 }
  0x1b   :  { %220 = shalt.err (!%p217_p12)
}
  0x1c   :  { %s221_s0 = scalar_lea.vmem %s289_s15, 512  ;;  %p226_p0 = scmp.lt.s32.totalorder %s289_s15, %s289_s15 }
  0x1d   :  { %p222_p13 = scmp.ne.s32.totalorder %s289_s15, %s221_s0  ;;  %p227_p1 = scmp.lt.s32.totalorder %s221_s0, %s221_s0 }
  0x1f   :  { %p228_p2 = por %p227_p1, %p226_p0 }
  0x21   :  { %p229_p3 = pnand %p228_p2, %p222_p13 }
  0x23   :  { %232 = shalt.err (!%p229_p3)
}
  0x24   :  { %s263_s9 = smov 128   ;;  %s264_s10 = smov 8  }
  0x25   :  { %32 = dma.hbm_to_vmem [thread:$0]  %s339_s1, 512, %s289_s15, [#allocation7], %s263_s9, %s263_s9, %s264_s10  }
  0x26   :  { %255 = dma.done.wait [#allocation4], 128  }
  0x27   :  { %256 = vsyncadd [#allocation4], 4294967168 }
  0x28   :  { %257 = dma.done.wait [#allocation7], 512  }
  0x29   :  { %258 = vsyncadd [#allocation7], 4294966784  ;;  %v265_v0 = vmov 0.0|0.0   ;;  %vm266_vm0 = vmmov 0   ;;  %v267_v1 = vmov 0.0   ;;  %v48_v2 = vld [vmem:[#allocation6] sm:$0xff] }
  0x2a   :  { %175 = vmatprep.subr.bf16.mxu0 %v265_v0  ;;  %172 = vmatprep.mubr.msk.f32.mxu0 %vm266_vm0, %v267_v1  ;;  %v49_v3 = vld [vmem:[#allocation6 + $0x8] sm:$0xff]  ;;  %v50_v4 = vld [vmem:[#allocation6 + $0x10] sm:$0xff]  ;;  %v51_v6 = vld [vmem:[#allocation6 + $0x18] sm:$0xff]  ;;  %vm52_vm1 = vcmask 261120   ;;  %s268_s14 = smov [#allocation8]  }
  0x2b   :  { %v176_v5 = vpack.c.bf16 %v49_v3, %v48_v2  ;;  %v179_v7 = vpack.c.bf16 %v51_v6, %v50_v4  ;;  %v47_v8 = vld [vmem:[#allocation3] sm:$0xff]  ;;  %s147_s15 = sshll.u32 %s268_s14, 4  ;;  %s148_s15 = int_to_ptr.vmem [resolvable:$true] %s147_s15 }
  0x2c   :  { %v158_v9 = vld [vmem:[%s340_s2] ss:$0 sm:$0xff]  ;;  %s233_s16 = scalar_lea.vmem %s148_s15, 128  ;;  %p238_p5 = scmp.lt.s32.totalorder %s148_s15, %s148_s15 }
  0x2d   :  { %177 = vmatpush3.bf16.msra.mxu0 %v176_v5  ;;  %p234_p4 = scmp.ne.s32.totalorder %s148_s15, %s233_s16  ;;  %p239_p6 = scmp.lt.s32.totalorder %s233_s16, %s233_s16 }
  0x2e   :  { %178 = vmatprep.subr.bf16.mxu0 %v265_v0 }
  0x2f   :  { %p240_p7 = por %p239_p6, %p238_p5 }
  0x31   :  { %180 = vmatpush3.bf16.msra.mxu0 %v179_v7  ;;  %p241_p8 = pnand %p240_p7, %p234_p4 }
  0x34   :  { %173 = vmatmul.mubr.msk.f32.vlgmr.msra.gmra.mrb[0].mxu0 %vm52_vm1, %v47_v8 }
 0x107   :  { %v122_v10 = vpop.f32.mrb[0].mxu0 }
 0x108   :  { %v139_v11 = vadd.f32 %v158_v9, %v122_v10  ;;  %v174_v12 = vpop.f32.mrb[1].mxu0 }
 0x10a   :  { %140 = vst [vmem:[#allocation8] sm:$0xff] %v139_v11 }
 0x10b   :  { %244 = shalt.err (!%p241_p8)
}
 0x10c   :  { %s245_s19 = scalar_lea.hbm %s341_s3, 128 }
 0x10d   :  { %p246_p9 = scmp.ne.s32.totalorder %s341_s3, %s245_s19  ;;  %p249_p10 = scmp.lt.u32.totalorder %s245_s19, %s341_s3 }
 0x10f   :  { %p251_p11 = pnand %p249_p10, %p246_p9 }
 0x111   :  { %254 = shalt.err (!%p251_p11)
}
 0x112   :  { %150 = dma.vmem_to_hbm [thread:$0]  %s148_s15, 128, %s341_s3, [#allocation5]  }
 0x113   :  { %259 = dma.done.wait [#allocation5], 128  }
 0x114   :  { %260 = vsyncadd [#allocation5], 4294967168 }
 0x115   :  { %154 = vsyncpa [#allocation4], 1 }
 0x116   :  { %155 = vsyncpa [#allocation7], 1 }
 0x117   :  { %156 = vsyncpa [#allocation5], 1 }

</bundles_post_ra>
